<compile_context>
chip_gen: v5e
topology: v5e:2x2
jax: 0.10.0
libtpu: 0.0.40
codegen_flags: <defaults>
</compile_context>

<pallas_src>
import jax
import jax.numpy as jnp
from jax.experimental import pallas as pl
from jax.experimental.pallas import tpu as pltpu


def _round_up(n, m):
    return (n + m - 1) // m * m


def _rbf_linear_kernel(gamma_ref, x_ref, w_ref, cb_ref, o_ref):
    """Fused RBF + Linear shortcut.

    x_ref : (tb, F)      input tile (f32)
    w_ref : (F, 2*Cp)    [ 2*gamma*centers^T | shortcut_w^T ]
    cb_ref: (2, Cp)      row 0 = gamma*||c||^2, row 1 = shortcut bias
    o_ref : (tb, Cp)
    """
    x = x_ref[...]                                            # (tb, F)
    g = gamma_ref[0]                                          # scalar from SMEM
    cb = cb_ref[...]                                          # (2, Cp)
    cp = cb.shape[1]

    # One MXU pass covers both the RBF cross-term and the shortcut matmul.
    fused = jnp.dot(x, w_ref[...], preferred_element_type=jnp.float32)  # (tb, 2Cp)
    xc2g = fused[:, :cp]                                      # 2*gamma * x.c
    ident = fused[:, cp:] + cb[1:2, :]                        # x @ w^T + b

    gx2 = g * jnp.sum(x * x, axis=-1, keepdims=True)          # gamma * ||x||^2  (tb, 1)
    expo = jnp.minimum(xc2g - gx2 - cb[0:1, :], 0.0)          # -gamma*||x-c||^2 <= 0
    o_ref[...] = jnp.exp(expo) + ident


def _rbf_identity_kernel(gamma_ref, x_ref, w_ref, csq_ref, o_ref):
    """RBF with Identity shortcut (F == C): identity = x, no dense shortcut."""
    x = x_ref[...]                                            # (tb, F) == (tb, C)
    g = gamma_ref[0]
    xc2g = jnp.dot(x, w_ref[...], preferred_element_type=jnp.float32)  # (tb, C)
    gx2 = g * jnp.sum(x * x, axis=-1, keepdims=True)
    expo = jnp.minimum(xc2g - gx2 - csq_ref[...], 0.0)
    o_ref[...] = jnp.exp(expo) + x


def rbf_layer(x, centers, gamma, w=None, b=None, *, tb=256):
    """RBFLayer forward.

    x: (B, F); centers: (C, F); gamma: scalar.
    If F != C:  w: (C, F), b: (C,)  -- the nn.Linear shortcut.
    If F == C:  w/b are ignored (nn.Identity shortcut fast path).
    Returns (B, C) float32.
    """
    B, F = x.shape
    C = centers.shape[0]

    # Keep f32 for the distance expansion (catastrophic cancellation in bf16).
    x = x.astype(jnp.float32)
    g = jnp.asarray(gamma, jnp.float32)
    gamma_arr = g.reshape(1)

    # Batch tiling: big sublane-dense tiles; pad B up to a tile multiple.
    tb = _round_up(min(tb, max(B, 8)), 8)
    Bp = _round_up(B, tb)
    if Bp != B:
        x = jnp.pad(x, ((0, Bp - B), (0, 0)))
    grid = (Bp // tb,)

    ct = centers.T.astype(jnp.float32)                        # (F, C)
    compiler_params = pltpu.CompilerParams(dimension_semantics=("parallel",))

    if F != C:
        assert w is not None and b is not None
        # Pad the center axis to a lane-dense multiple of 128.
        Cp = _round_up(C, 128)
        ct_p = jnp.pad(ct, ((0, 0), (0, Cp - C)))
        wt_p = jnp.pad(w.T.astype(jnp.float32), ((0, 0), (0, Cp - C)))
        b_p = jnp.pad(b.astype(jnp.float32), (0, Cp - C))

        w_fused = jnp.concatenate([2.0 * g * ct_p, wt_p], axis=1)        # (F, 2Cp)
        cb = jnp.stack([g * jnp.sum(ct_p * ct_p, axis=0), b_p], axis=0)  # (2, Cp)

        out = pl.pallas_call(
            _rbf_linear_kernel,
            out_shape=jax.ShapeDtypeStruct((Bp, Cp), jnp.float32),
            grid_spec=pltpu.PrefetchScalarGridSpec(
                num_scalar_prefetch=0,
                grid=grid,
                in_specs=[
                    pl.BlockSpec(memory_space=pltpu.MemorySpace.SMEM),  # gamma (1,)
                    pl.BlockSpec((tb, F), lambda i: (i, 0)),            # x tile
                    pl.BlockSpec((F, 2 * Cp), lambda i: (0, 0)),        # fused weight
                    pl.BlockSpec((2, Cp), lambda i: (0, 0)),            # [g*||c||^2; b]
                ],
                out_specs=pl.BlockSpec((tb, Cp), lambda i: (i, 0)),
            ),
            compiler_params=compiler_params,
        )(gamma_arr, x, w_fused, cb)
        return out[:B, :C]

    # F == C: Identity shortcut -> skip the dense shortcut matmul entirely.
    w_rbf = 2.0 * g * ct                                      # (F, C)
    csq = (g * jnp.sum(ct * ct, axis=0)).reshape(1, C)        # (1, C)
    out = pl.pallas_call(
        _rbf_identity_kernel,
        out_shape=jax.ShapeDtypeStruct((Bp, C), jnp.float32),
        grid_spec=pltpu.PrefetchScalarGridSpec(
            num_scalar_prefetch=0,
            grid=grid,
            in_specs=[
                pl.BlockSpec(memory_space=pltpu.MemorySpace.SMEM),      # gamma (1,)
                pl.BlockSpec((tb, F), lambda i: (i, 0)),                # x tile
                pl.BlockSpec((F, C), lambda i: (0, 0)),                 # 2*gamma*c^T
                pl.BlockSpec((1, C), lambda i: (0, 0)),                 # gamma*||c||^2
            ],
            out_specs=pl.BlockSpec((tb, C), lambda i: (i, 0)),
        ),
        compiler_params=compiler_params,
    )(gamma_arr, x, w_rbf, csq)
    return out[:B]


if __name__ == "__main__":
    key = jax.random.PRNGKey(0)
    gamma = 0.1

    # ---- Linear-shortcut path (F != C) ----
    B, F, C = 512, 32, 64
    k1, k2, k3, k4, k5 = jax.random.split(key, 5)
    x = jax.random.normal(k1, (B, F), jnp.float32)
    # centers: xavier_normal_ -> std = sqrt(2 / (fan_in + fan_out))
    centers = jax.random.normal(k2, (C, F), jnp.float32) * jnp.sqrt(2.0 / (C + F))
    # shortcut = nn.Linear(F, C): weight (C, F), bias (C,), U(-1/sqrt(F), 1/sqrt(F))
    bound = 1.0 / jnp.sqrt(jnp.float32(F))
    w = jax.random.uniform(k3, (C, F), jnp.float32, -bound, bound)
    b = jax.random.uniform(k4, (C,), jnp.float32, -bound, bound)

    out = jax.block_until_ready(rbf_layer(x, centers, gamma, w, b))
    dist = jnp.linalg.norm(x[:, None, :] - centers[None, :, :], axis=2)
    ref = jnp.exp(-gamma * dist ** 2) + (x @ w.T + b)
    assert out.shape == (B, C)
    assert jnp.allclose(out, ref, atol=1e-4, rtol=1e-4), "linear-path mismatch"

    # ---- Identity-shortcut fast path (F == C) ----
    B2, F2 = 64, 32
    x2 = jax.random.normal(k5, (B2, F2), jnp.float32)
    centers2 = jax.random.normal(k2, (F2, F2), jnp.float32) * jnp.sqrt(2.0 / (2 * F2))
    out2 = jax.block_until_ready(rbf_layer(x2, centers2, gamma))
    dist2 = jnp.linalg.norm(x2[:, None, :] - centers2[None, :, :], axis=2)
    ref2 = jnp.exp(-gamma * dist2 ** 2) + x2
    assert out2.shape == (B2, F2)
    assert jnp.allclose(out2, ref2, atol=1e-4, rtol=1e-4), "identity-path mismatch"

    print("KERNEL_OK")
</pallas_src>

<mosaic_0001>
module attributes {stable_mosaic.version = 11 : i64} {
  func.func @_rbf_linear_kernel(%arg0: i32, %arg1: memref<1xf32, #tpu.memory_space<smem>>, %arg2: memref<256x32xf32, #tpu.memory_space<vmem>>, %arg3: memref<32x256xf32, #tpu.memory_space<vmem>>, %arg4: memref<2x128xf32, #tpu.memory_space<vmem>>, %arg5: memref<256x128xf32, #tpu.memory_space<vmem>>) attributes {dimension_semantics = [#tpu.dimension_semantics<parallel>], iteration_bounds = array<i64: 2>, scalar_prefetch = 0 : i64, scratch_operands = 0 : i64, tpu.core_type = #tpu.core_type<tc>, window_params = [{transform_indices = @transform_0, window_bounds = array<i64: 1>}, {transform_indices = @transform_1, window_bounds = array<i64: 256, 32>}, {pipeline_mode = #tpu.pipeline_mode<synchronous>, transform_indices = @transform_2, window_bounds = array<i64: 32, 256>}, {pipeline_mode = #tpu.pipeline_mode<synchronous>, transform_indices = @transform_3, window_bounds = array<i64: 2, 128>}, {transform_indices = @transform_4, window_bounds = array<i64: 256, 128>}]} {
    %c0 = arith.constant 0 : index
    %c0_0 = arith.constant 0 : index
    %0 = vector.load %arg2[%c0, %c0_0] : memref<256x32xf32, #tpu.memory_space<vmem>>, vector<256x32xf32>
    %c0_1 = arith.constant 0 : index
    %1 = memref.load %arg1[%c0_1] : memref<1xf32, #tpu.memory_space<smem>>
    %c0_2 = arith.constant 0 : index
    %c0_3 = arith.constant 0 : index
    %2 = vector.load %arg4[%c0_2, %c0_3] : memref<2x128xf32, #tpu.memory_space<vmem>>, vector<2x128xf32>
    %c0_4 = arith.constant 0 : index
    %c0_5 = arith.constant 0 : index
    %3 = vector.load %arg3[%c0_4, %c0_5] : memref<32x256xf32, #tpu.memory_space<vmem>>, vector<32x256xf32>
    %cst = arith.constant dense<0.000000e+00> : vector<256x256xf32>
    %4 = tpu.matmul %0, %3, %cst {dimension_numbers = #tpu.dot_dimension_numbers<[1], [0], [0], [1], [0, 0, 1, 1], [], []>} : vector<256x32xf32>, vector<32x256xf32>, vector<256x256xf32> -> vector<256x256xf32>
    %5 = vector.extract_strided_slice %4 {offsets = [0, 0], sizes = [256, 128], strides = [1, 1]} : vector<256x256xf32> to vector<256x128xf32>
    %6 = vector.extract_strided_slice %4 {offsets = [0, 128], sizes = [256, 128], strides = [1, 1]} : vector<256x256xf32> to vector<256x128xf32>
    %7 = vector.extract_strided_slice %2 {offsets = [1, 0], sizes = [1, 128], strides = [1, 1]} : vector<2x128xf32> to vector<1x128xf32>
    %8 = vector.broadcast %7 : vector<1x128xf32> to vector<256x128xf32>
    %9 = arith.addf %6, %8 : vector<256x128xf32>
    %10 = arith.mulf %0, %0 : vector<256x32xf32>
    %cst_6 = arith.constant dense<0.000000e+00> : vector<256xf32>
    %11 = vector.multi_reduction <add>, %10, %cst_6 [1] : vector<256x32xf32> to vector<256xf32>
    %12 = vector.shape_cast %11 : vector<256xf32> to vector<256x1xf32>
    %13 = vector.broadcast %1 : f32 to vector<256x1xf32>
    %14 = arith.mulf %13, %12 : vector<256x1xf32>
    %15 = vector.broadcast %14 : vector<256x1xf32> to vector<256x128xf32>
    %16 = arith.subf %5, %15 : vector<256x128xf32>
    %17 = vector.extract_strided_slice %2 {offsets = [0, 0], sizes = [1, 128], strides = [1, 1]} : vector<2x128xf32> to vector<1x128xf32>
    %18 = vector.broadcast %17 : vector<1x128xf32> to vector<256x128xf32>
    %19 = arith.subf %16, %18 : vector<256x128xf32>
    %cst_7 = arith.constant 0.000000e+00 : f32
    %20 = vector.broadcast %cst_7 : f32 to vector<256x128xf32>
    %21 = arith.minimumf %19, %20 : vector<256x128xf32>
    %22 = math.exp %21 : vector<256x128xf32>
    %23 = arith.addf %22, %9 : vector<256x128xf32>
    %c0_8 = arith.constant 0 : index
    %c0_9 = arith.constant 0 : index
    %24 = vector.load %arg5[%c0_8, %c0_9] : memref<256x128xf32, #tpu.memory_space<vmem>>, vector<256x128xf32>
    tpu.vector_store %arg5[%c0_8, %c0_9], %23 {strides = array<i32>} : memref<256x128xf32, #tpu.memory_space<vmem>>, vector<256x128xf32>,
    return
  }
  func.func @transform_0(%arg0: i32) -> i32 {
    %c0_i32 = arith.constant 0 : i32
    %c0_i32_0 = arith.constant 0 : i32
    return %c0_i32 : i32
  }
  func.func @transform_1(%arg0: i32) -> (i32, i32) {
    %c0_i32 = arith.constant 0 : i32
    %c0_i32_0 = arith.constant 0 : i32
    return %arg0, %c0_i32 : i32, i32
  }
  func.func @transform_2(%arg0: i32) -> (i32, i32) {
    %c0_i32 = arith.constant 0 : i32
    %c0_i32_0 = arith.constant 0 : i32
    %c0_i32_1 = arith.constant 0 : i32
    return %c0_i32, %c0_i32_0 : i32, i32
  }
  func.func @transform_3(%arg0: i32) -> (i32, i32) {
    %c0_i32 = arith.constant 0 : i32
    %c0_i32_0 = arith.constant 0 : i32
    %c0_i32_1 = arith.constant 0 : i32
    return %c0_i32, %c0_i32_0 : i32, i32
  }
  func.func @transform_4(%arg0: i32) -> (i32, i32) {
    %c0_i32 = arith.constant 0 : i32
    %c0_i32_0 = arith.constant 0 : i32
    return %arg0, %c0_i32 : i32, i32
  }
}

</mosaic_0001>

<bundles_post_ra>
// kernel: tpu_custom_call.1
= control target key start
LH: loop header
LB: loop body
LE: loop exit
PB: predicated region body
PF: predicated region fallthrough
CT: control target
= control target key end

     0   :  { %s1872_s0 = inlined_call_operand.<no memory space> [shape: f32[1], index: 0, kind: input, shape index: {}]   ;;  %s1873_s1 = inlined_call_operand.vmem [shape: f32[512,32], index: 1, kind: input, shape index: {}]   ;;  %s1874_s2 = inlined_call_operand.vmem [shape: f32[32,256], index: 2, kind: input, shape index: {}]   ;;  %s1875_s3 = inlined_call_operand.vmem [shape: f32[2,128], index: 3, kind: input, shape index: {}]   ;;  %s1876_s4 = inlined_call_operand.hbm [shape: f32[512,128], index: 4, kind: output, shape index: {}]  }
   0x1   :  { %9 = sst [smem:[#allocation2]] %s1872_s0 }
   0x2   :  { %10 = vsyncpa [#allocation4], 0 }
   0x3   :  { %12 = vsyncpa [#allocation4 + $0x1], 0  ;;  %s1346_s17 = smov 0   ;;  %s1348_s18 = smov 0  }
   0x4   :  { %s1350_s19 = smov 0   ;;  %s1352_s20 = smov 0  }
   0x5 LB: > { %s1367_s0 = sadd.s32 4294967295, %s1314_s20   ;;  %s1062_s21 = sadd.s32 4294967294, %s1314_s20   ;;  %s1314_s20 = sphi %s1352_s20, %s1882_s20   ;;  %s1310_s19 = sphi %s1350_s19, %s1881_s19   ;;  %s1306_s18 = sphi %s1348_s18, %s1880_s18   ;;  %s1302_s17 = sphi %s1346_s17, %s1879_s17  }
   0x6   : > { %s1371_s22 = sadd.s32 1, %s1314_s20   ;;  %s114_s23 = sadd.s32 1, %s1310_s19 }
   0x7   : > { %s111_s24 = ssub.s32 %s1314_s20, %s1371_s22  ;;  %p124_p0 = scmp.ne.s32.totalorder %s1310_s19, %s1306_s18 }
   0x8   : > { %p112_p1 = scmp.eq.s32.totalorder %s111_s24, 0  ;;  %p125_p2 = scmp.eq.s32.totalorder %s1367_s0, 1 }
   0x9   : > { %p130_p3 = scmp.ne.s32.totalorder %s1306_s18, %s1302_s17  ;;  %p131_p4 = scmp.eq.s32.totalorder %s1062_s21, 1 }
   0xa   : > { %s1382_s25 = scalar_select %p112_p1, %s1310_s19, %s114_s23  }
   0xb   : > { %p1384_p5 = por %p125_p2, %p124_p0  ;;  %p1388_p6 = por %p131_p4, %p130_p3 }
   0xc   : > { %p1065_p7 = scmp.ge.s32.totalorder %s1314_s20, 1  ;;  %p167_p8 = scmp.lt.s32.totalorder %s1314_s20, 3 }
   0xe   : > { %p168_p9 = pnand %p1065_p7, %p167_p8 }
   0xf   : > { %s1067_s6 = sshll.u32 (!%p168_p9), %s1367_s0, 5  ;;  %s232_s5 = sld [smem:[#allocation2]] (!%p168_p9) }
  0x10   : > { %171 = sbr.rel (%p168_p9) target bundleno = 302 (0x12e), region = 36  ;;  %p194_p10 = scmp.lt.s32.totalorder (!%p168_p9), %s1067_s6, 63 }
  0x11   : > { %s190_s8 = sand.u32 (!%p168_p9), 1, %s1306_s18   ;;  %s1138_s11 = sshll.u32 (!%p168_p9), %s1367_s0, 8 }
  0x12   : > { %s1066_s9 = sshll.u32 (!%p168_p9), %s190_s8, 8  ;;  %s996_s14 = scalar_lea.hbm (!%p168_p9), %s1876_s4, %s1138_s11 }
  0x13   : > { %s1674_s10 = scalar_lea.vmem (!%p168_p9), [#allocation3], %s1066_s9  ;;  %s999_s0 = sshll.u32 (!%p168_p9), %s996_s14, 4  ;;  %s1000_s0 = int_to_ptr.hbm [resolvable:$true] %s999_s0 }
  0x14   : > { %s997_s15 = sshll.u32 (!%p168_p9), %s1674_s10, 4  ;;  %s985_s16 = scalar_lea.sflag (!%p168_p9), [#allocation4], %s190_s8  ;;  %s998_s15 = int_to_ptr.vmem [resolvable:$true] %s997_s15 }
  0x15   : > { %v240_v0 = vld [vmem:[%s1874_s2 + $0x30] sm:$0xff]  ;;  %v238_v1 = vld [vmem:[%s1874_s2 + $0x20] sm:$0xff]  ;;  %v241_v2 = vld [vmem:[%s1874_s2 + $0x38] sm:$0xff]  ;;  %s1884_s6 = smov (!%p194_p10, %s1067_s6), 63  ;;  %vm242_vm0 = vcmask 261120   ;;  %s1272_s29 = scalar_lea.hbm %s1876_s4, 512 }
  0x16   : > { %351 = vmatpush.msra.mxu0 %v240_v0  ;;  %1139 = vmatpush.msra.mxu2 %v240_v0  ;;  %v239_v3 = vld [vmem:[%s1874_s2 + $0x28] sm:$0xff]  ;;  %v236_v4 = vld [vmem:[%s1874_s2 + $0x10] sm:$0xff]  ;;  %v237_v5 = vld [vmem:[%s1874_s2 + $0x18] sm:$0xff]  ;;  %s1068_s21 = sshll.u32 %s1884_s6, 3 }
  0x17   : > { %464 = vmatpush.msra.mxu1 %v241_v2  ;;  %1143 = vmatpush.msra.mxu3 %v241_v2  ;;  %v234_v6 = vld [vmem:[%s1874_s2] sm:$0xff]  ;;  %s1419_s28 = scalar_lea.vmem %s1873_s1, %s1068_s21  ;;  %v235_v7 = vld [vmem:[%s1874_s2 + $0x8] sm:$0xff]  ;;  %s1266_s21 = sshra.s32 %s1000_s0, 4  ;;  %s1267_s21 = int_to_ptr.hbm [resolvable:$true] %s1266_s21 }
  0x18   : > { %352 = vmatpush.msra.mxu0 %v238_v1  ;;  %1140 = vmatpush.msra.mxu2 %v238_v1  ;;  %v200_v8 = vld [vmem:[%s1419_s28] sm:$0xff]  ;;  %v202_v12 = vld [vmem:[%s1419_s28 + $0x10] sm:$0xff]  ;;  %v201_v15 = vld [vmem:[%s1419_s28 + $0x8] sm:$0xff]  ;;  %s1268_s23 = scalar_lea.hbm %s1267_s21, 256  ;;  %p1273_p0 = scmp.lt.s32.totalorder %s1267_s21, %s1876_s4 }
  0x19   : > { %465 = vmatpush.msra.mxu1 %v239_v3  ;;  %1144 = vmatpush.msra.mxu3 %v239_v3  ;;  %v1426_v9 = vld [vmem:[%s1419_s28 + $0x80] sm:$0xff]  ;;  %v598_v13 = vmul.f32 %v200_v8, %v200_v8  ;;  %v600_v14 = vmul.f32 %v202_v12, %v202_v12  ;;  %v1439_v16 = vld [vmem:[%s1419_s28 + $0x28] sm:$0xff]  ;;  %v203_v19 = vld [vmem:[%s1419_s28 + $0x18] sm:$0xff]  ;;  %v599_v22 = vmul.f32 %v201_v15, %v201_v15  ;;  %p1269_p11 = scmp.ne.s32.totalorder %s1267_s21, %s1268_s23  ;;  %p1274_p1 = scmp.lt.s32.totalorder %s1272_s29, %s1268_s23 }
  0x1a   : > { %353 = vmatpush.msra.mxu0 %v236_v4  ;;  %1141 = vmatpush.msra.mxu2 %v236_v4  ;;  %v1429_v10 = vld [vmem:[%s1419_s28 + $0x20] sm:$0xff]  ;;  %v603_v21 = vmul.f32 %v1439_v16, %v1439_v16  ;;  %v1451_v23 = vld [vmem:[%s1419_s28 + $0x88] sm:$0xff]  ;;  %v601_v24 = vmul.f32 %v203_v19, %v203_v19  ;;  %v1463_v29 = vld [vmem:[%s1419_s28 + $0x30] sm:$0xff]  ;;  %v614_v62 = vmul.f32 %v1426_v9, %v1426_v9 }
  0x1b   : > { %466 = vmatpush.msra.mxu1 %v237_v5  ;;  %1145 = vmatpush.msra.mxu3 %v237_v5  ;;  %v602_v11 = vmul.f32 %v1429_v10, %v1429_v10  ;;  %v630_v18 = vsel %vm242_vm0, %v598_v13, 0.0  ;;  %v636_v20 = vsel %vm242_vm0, %v600_v14, 0.0  ;;  %v633_v26 = vsel %vm242_vm0, %v599_v22, 0.0  ;;  %v1460_v28 = vld [vmem:[%s1419_s28 + $0x40] sm:$0xff]  ;;  %v1466_v30 = vld [vmem:[%s1419_s28 + $0x38] sm:$0xff]  ;;  %v218_v33 = vld [vmem:[%s1419_s28 + $0x90] sm:$0xff]  ;;  %p1270_p12 = pnand %p1269_p11, %p1384_p5  ;;  %p1275_p2 = por %p1274_p1, %p1273_p0 }
  0x1c   : > { %354 = vmatpush.msra.mxu0 %v234_v6  ;;  %1142 = vmatpush.msra.mxu2 %v234_v6  ;;  %v645_v25 = vsel %vm242_vm0, %v603_v21, 0.0  ;;  %v639_v27 = vsel %vm242_vm0, %v601_v24, 0.0  ;;  %v606_v31 = vmul.f32 %v1460_v28, %v1460_v28  ;;  %v604_v32 = vmul.f32 %v1463_v29, %v1463_v29  ;;  %v1484_v38 = vld [vmem:[%s1419_s28 + $0x58] sm:$0xff]  ;;  %v1487_v39 = vld [vmem:[%s1419_s28 + $0x48] sm:$0xff]  ;;  %v1490_v40 = vld [vmem:[%s1419_s28 + $0x50] sm:$0xff] }
  0x1d   : > { %1069 = vmatmul.msk.f32.vlgmr.msra.gmra.mxu0 %vm242_vm0, %v200_v8  ;;  %1085 = vmatmul.msk.f32.vlgmr.msra.gmra.mxu2 %vm242_vm0, %v1426_v9  ;;  %v642_v17 = vsel %vm242_vm0, %v602_v11, 0.0  ;;  %v605_v34 = vmul.f32 %v1466_v30, %v1466_v30  ;;  %v609_v41 = vmul.f32 %v1484_v38, %v1484_v38  ;;  %v607_v42 = vmul.f32 %v1487_v39, %v1487_v39  ;;  %v219_v43 = vld [vmem:[%s1419_s28 + $0x98] sm:$0xff]  ;;  %v1507_v48 = vld [vmem:[%s1419_s28 + $0x70] sm:$0xff]  ;;  %v1510_v49 = vld [vmem:[%s1419_s28 + $0x60] sm:$0xff]  ;;  %p1271_p13 = pneg %p1270_p12 }
  0x1e   : > { %467 = vmatpush.msra.mxu1 %v235_v7  ;;  %1146 = vmatpush.msra.mxu3 %v235_v7  ;;  %v654_v35 = vsel %vm242_vm0, %v606_v31, 0.0  ;;  %v648_v36 = vsel %vm242_vm0, %v604_v32, 0.0  ;;  %v608_v44 = vmul.f32 %v1490_v40, %v1490_v40  ;;  %v1513_v50 = vld [vmem:[%s1419_s28 + $0x68] sm:$0xff]  ;;  %v612_v51 = vmul.f32 %v1507_v48, %v1507_v48  ;;  %v220_v53 = vld [vmem:[%s1419_s28 + $0xa0] sm:$0xff]  ;;  %v1531_v58 = vld [vmem:[%s1419_s28 + $0x78] sm:$0xff] }
  0x1f   : > { %1101 = vmatmul.msk.f32.vlgmr.msra.gmra.mxu1 %vm242_vm0, %v200_v8  ;;  %1117 = vmatmul.msk.f32.vlgmr.msra.gmra.mxu3 %vm242_vm0, %v1426_v9  ;;  %v651_v37 = vsel %vm242_vm0, %v605_v34, 0.0  ;;  %v663_v45 = vsel %vm242_vm0, %v609_v41, 0.0  ;;  %v657_v46 = vsel %vm242_vm0, %v607_v42, 0.0  ;;  %v610_v52 = vmul.f32 %v1510_v49, %v1510_v49  ;;  %v221_v61 = vld [vmem:[%s1419_s28 + $0xa8] sm:$0xff]  ;;  %v222_v4 = vld [vmem:[%s1419_s28 + $0xb0] sm:$0xff]  ;;  %v223_v9 = vld [vmem:[%s1419_s28 + $0xb8] sm:$0xff]  ;;  %p1276_p3 = pnand %p1275_p2, %p1271_p13 }
  0x20   : > { %643 = vadd.xlane.f32.xlu2 %v642_v17  ;;  %631 = vadd.xlane.f32.xlu0 %v630_v18  ;;  %v660_v47 = vsel %vm242_vm0, %v608_v44, 0.0  ;;  %v611_v54 = vmul.f32 %v1513_v50, %v1513_v50  ;;  %v672_v55 = vsel %vm242_vm0, %v612_v51, 0.0  ;;  %v615_v59 = vmul.f32 %v1451_v23, %v1451_v23  ;;  %v226_v17 = vld [vmem:[%s1419_s28 + $0xd0] sm:$0xff]  ;;  %v225_v18 = vld [vmem:[%s1419_s28 + $0xc8] sm:$0xff]  ;;  %v233_v44 = vld [vmem:[%s1875_s3] sm:$0x3] }
  0x21   : > { %637 = vadd.xlane.f32.xlu1 %v636_v20  ;;  %v666_v56 = vsel %vm242_vm0, %v610_v52, 0.0  ;;  %v613_v60 = vmul.f32 %v1531_v58, %v1531_v58  ;;  %v678_v1 = vsel %vm242_vm0, %v614_v62, 0.0  ;;  %v618_v2 = vmul.f32 %v220_v53, %v220_v53  ;;  %v229_v31 = vld [vmem:[%s1419_s28 + $0xe8] sm:$0xff]  ;;  %v230_v34 = vld [vmem:[%s1419_s28 + $0xf0] sm:$0xff] }
  0x22   : > { %v669_v57 = vsel %vm242_vm0, %v611_v54, 0.0  ;;  %v681_v63 = vsel %vm242_vm0, %v615_v59, 0.0  ;;  %v616_v3 = vmul.f32 %v218_v33, %v218_v33  ;;  %v617_v5 = vmul.f32 %v219_v43, %v219_v43 }
  0x23   : > { %v675_v0 = vsel %vm242_vm0, %v613_v60, 0.0  ;;  %v690_v6 = vsel %vm242_vm0, %v618_v2, 0.0  ;;  %v621_v11 = vmul.f32 %v223_v9, %v223_v9  ;;  %v624_v20 = vmul.f32 %v226_v17, %v226_v17 }
  0x24   : > { %v684_v7 = vsel %vm242_vm0, %v616_v3, 0.0  ;;  %v687_v8 = vsel %vm242_vm0, %v617_v5, 0.0  ;;  %v623_v21 = vmul.f32 %v225_v18, %v225_v18  ;;  %v627_v32 = vmul.f32 %v229_v31, %v229_v31 }
  0x25   : > { %1070 = vmatmul.msk.f32.gmra.mxu0 %vm242_vm0, %v201_v15  ;;  %1086 = vmatmul.msk.f32.gmra.mxu2 %vm242_vm0, %v1451_v23  ;;  %v699_v14 = vsel %vm242_vm0, %v621_v11, 0.0  ;;  %v1632_v42 = vstv %s232_s5  ;;  %v1652_v59 = vperm.slane %v233_v44, 1 }
  0x26   : > { %v705_v24 = vsel %vm242_vm0, %v623_v21, 0.0 }
  0x27   : > { %1102 = vmatmul.msk.f32.gmra.mxu1 %vm242_vm0, %v201_v15  ;;  %1118 = vmatmul.msk.f32.gmra.mxu3 %vm242_vm0, %v1451_v23  ;;  %v708_v23 = vsel %vm242_vm0, %v624_v20, 0.0 }
  0x28   : > { %646 = vadd.xlane.f32.xlu2 %v645_v25  ;;  %634 = vadd.xlane.f32.xlu0 %v633_v26  ;;  %v227_v25 = vld [vmem:[%s1419_s28 + $0xd8] sm:$0xff] }
  0x29   : > { %640 = vadd.xlane.f32.xlu1 %v639_v27  ;;  %v625_v26 = vmul.f32 %v227_v25, %v227_v25  ;;  %v228_v27 = vld [vmem:[%s1419_s28 + $0xe0] sm:$0xff] }
  0x2d   : > { %1071 = vmatmul.msk.f32.gmra.mxu0 %vm242_vm0, %v202_v12  ;;  %1087 = vmatmul.msk.f32.gmra.mxu2 %vm242_vm0, %v218_v33 }
  0x2f   : > { %1103 = vmatmul.msk.f32.gmra.mxu1 %vm242_vm0, %v202_v12  ;;  %1119 = vmatmul.msk.f32.gmra.mxu3 %vm242_vm0, %v218_v33  ;;  %v620_v12 = vmul.f32 %v222_v4, %v222_v4  ;;  %v717_v33 = vsel %vm242_vm0, %v627_v32, 0.0 }
  0x30   : > { %655 = vadd.xlane.f32.xlu2 %v654_v35  ;;  %649 = vadd.xlane.f32.xlu0 %v648_v36  ;;  %v628_v35 = vmul.f32 %v230_v34, %v230_v34 }
  0x31   : > { %652 = vadd.xlane.f32.xlu1 %v651_v37  ;;  %v696_v15 = vsel %vm242_vm0, %v620_v12, 0.0  ;;  %v231_v37 = vld [vmem:[%s1419_s28 + $0xf8] sm:$0xff] }
  0x32   : > { %v720_v36 = vsel %vm242_vm0, %v628_v35, 0.0 }
  0x35   : > { %1072 = vmatmul.msk.f32.gmra.mxu0 %vm242_vm0, %v203_v19  ;;  %1088 = vmatmul.msk.f32.gmra.mxu2 %vm242_vm0, %v219_v43 }
  0x37   : > { %1104 = vmatmul.msk.f32.gmra.mxu1 %vm242_vm0, %v203_v19  ;;  %1120 = vmatmul.msk.f32.gmra.mxu3 %vm242_vm0, %v219_v43 }
  0x38   : > { %664 = vadd.xlane.f32.xlu2 %v663_v45  ;;  %658 = vadd.xlane.f32.xlu0 %v657_v46  ;;  %v1644_v46 = vperm.slane %v233_v44, 0 }
  0x39   : > { %661 = vadd.xlane.f32.xlu1 %v660_v47 }
  0x3d   : > { %1073 = vmatmul.msk.f32.gmra.mxu0 %vm242_vm0, %v1429_v10  ;;  %1089 = vmatmul.msk.f32.gmra.mxu2 %vm242_vm0, %v220_v53 }
  0x3f   : > { %1105 = vmatmul.msk.f32.gmra.mxu1 %vm242_vm0, %v1429_v10  ;;  %1121 = vmatmul.msk.f32.gmra.mxu3 %vm242_vm0, %v220_v53  ;;  %v619_v10 = vmul.f32 %v221_v61, %v221_v61 }
  0x40   : > { %673 = vadd.xlane.f32.xlu2 %v672_v55  ;;  %667 = vadd.xlane.f32.xlu0 %v666_v56 }
  0x41   : > { %670 = vadd.xlane.f32.xlu1 %v669_v57  ;;  %v693_v13 = vsel %vm242_vm0, %v619_v10, 0.0 }
  0x45   : > { %1074 = vmatmul.msk.f32.gmra.mxu0 %vm242_vm0, %v1439_v16  ;;  %1090 = vmatmul.msk.f32.gmra.mxu2 %vm242_vm0, %v221_v61 }
  0x47   : > { %1106 = vmatmul.msk.f32.gmra.mxu1 %vm242_vm0, %v1439_v16  ;;  %1122 = vmatmul.msk.f32.gmra.mxu3 %vm242_vm0, %v221_v61  ;;  %v224_v16 = vld [vmem:[%s1419_s28 + $0xc0] sm:$0xff] }
  0x48   : > { %682 = vadd.xlane.f32.xlu2 %v681_v63  ;;  %676 = vadd.xlane.f32.xlu0 %v675_v0  ;;  %v622_v19 = vmul.f32 %v224_v16, %v224_v16 }
  0x49   : > { %679 = vadd.xlane.f32.xlu1 %v678_v1 }
  0x4a   : > { %v702_v22 = vsel %vm242_vm0, %v622_v19, 0.0 }
  0x4d   : > { %1075 = vmatmul.msk.f32.gmra.mxu0 %vm242_vm0, %v1463_v29  ;;  %1091 = vmatmul.msk.f32.gmra.mxu2 %vm242_vm0, %v222_v4 }
  0x4f   : > { %1107 = vmatmul.msk.f32.gmra.mxu1 %vm242_vm0, %v1463_v29  ;;  %1123 = vmatmul.msk.f32.gmra.mxu3 %vm242_vm0, %v222_v4  ;;  %v711_v29 = vsel %vm242_vm0, %v625_v26, 0.0 }
  0x50   : > { %691 = vadd.xlane.f32.xlu2 %v690_v6  ;;  %685 = vadd.xlane.f32.xlu0 %v684_v7 }
  0x51   : > { %688 = vadd.xlane.f32.xlu1 %v687_v8 }
  0x55   : > { %1076 = vmatmul.msk.f32.gmra.mxu0 %vm242_vm0, %v1466_v30  ;;  %1092 = vmatmul.msk.f32.gmra.mxu2 %vm242_vm0, %v223_v9 }
  0x57   : > { %1108 = vmatmul.msk.f32.gmra.mxu1 %vm242_vm0, %v1466_v30  ;;  %1124 = vmatmul.msk.f32.gmra.mxu3 %vm242_vm0, %v223_v9  ;;  %v626_v30 = vmul.f32 %v228_v27, %v228_v27 }
  0x58   : > { %694 = vadd.xlane.f32.xlu0 %v693_v13  ;;  %700 = vadd.xlane.f32.xlu2 %v699_v14 }
  0x59   : > { %697 = vadd.xlane.f32.xlu1 %v696_v15 }
  0x5d   : > { %1077 = vmatmul.msk.f32.gmra.mxu0 %vm242_vm0, %v1460_v28  ;;  %1093 = vmatmul.msk.f32.gmra.mxu2 %vm242_vm0, %v224_v16 }
  0x5f   : > { %1109 = vmatmul.msk.f32.gmra.mxu1 %vm242_vm0, %v1460_v28  ;;  %1125 = vmatmul.msk.f32.gmra.mxu3 %vm242_vm0, %v224_v16  ;;  %v714_v28 = vsel %vm242_vm0, %v626_v30, 0.0 }
  0x60   : > { %703 = vadd.xlane.f32.xlu0 %v702_v22  ;;  %709 = vadd.xlane.f32.xlu2 %v708_v23 }
  0x61   : > { %706 = vadd.xlane.f32.xlu1 %v705_v24 }
  0x65   : > { %1078 = vmatmul.msk.f32.gmra.mxu0 %vm242_vm0, %v1487_v39  ;;  %1094 = vmatmul.msk.f32.gmra.mxu2 %vm242_vm0, %v225_v18 }
  0x67   : > { %1110 = vmatmul.msk.f32.gmra.mxu1 %vm242_vm0, %v1487_v39  ;;  %1126 = vmatmul.msk.f32.gmra.mxu3 %vm242_vm0, %v225_v18  ;;  %v629_v39 = vmul.f32 %v231_v37, %v231_v37 }
  0x68   : > { %712 = vadd.xlane.f32.xlu0 %v711_v29  ;;  %718 = vadd.xlane.f32.xlu2 %v717_v33 }
  0x69   : > { %715 = vadd.xlane.f32.xlu1 %v714_v28 }
  0x6d   : > { %1079 = vmatmul.msk.f32.gmra.mxu0 %vm242_vm0, %v1490_v40  ;;  %1095 = vmatmul.msk.f32.gmra.mxu2 %vm242_vm0, %v226_v17 }
  0x6f   : > { %1111 = vmatmul.msk.f32.gmra.mxu1 %vm242_vm0, %v1490_v40  ;;  %1127 = vmatmul.msk.f32.gmra.mxu3 %vm242_vm0, %v226_v17 }
  0x70   : > { %721 = vadd.xlane.f32.xlu0 %v720_v36 }
  0x75   : > { %1080 = vmatmul.msk.f32.gmra.mxu0 %vm242_vm0, %v1484_v38  ;;  %1096 = vmatmul.msk.f32.gmra.mxu2 %vm242_vm0, %v227_v25 }
  0x77   : > { %1112 = vmatmul.msk.f32.gmra.mxu1 %vm242_vm0, %v1484_v38  ;;  %1128 = vmatmul.msk.f32.gmra.mxu3 %vm242_vm0, %v227_v25  ;;  %v723_v38 = vsel %vm242_vm0, %v629_v39, 0.0 }
  0x78   : > { %724 = vadd.xlane.f32.xlu1 %v723_v38 }
  0x7d   : > { %1081 = vmatmul.msk.f32.gmra.mxu0 %vm242_vm0, %v1510_v49  ;;  %1097 = vmatmul.msk.f32.gmra.mxu2 %vm242_vm0, %v228_v27 }
  0x7f   : > { %1113 = vmatmul.msk.f32.gmra.mxu1 %vm242_vm0, %v1510_v49  ;;  %1129 = vmatmul.msk.f32.gmra.mxu3 %vm242_vm0, %v228_v27 }
  0x85   : > { %1082 = vmatmul.msk.f32.gmra.mxu0 %vm242_vm0, %v1513_v50  ;;  %1098 = vmatmul.msk.f32.gmra.mxu2 %vm242_vm0, %v229_v31 }
  0x87   : > { %1114 = vmatmul.msk.f32.gmra.mxu1 %vm242_vm0, %v1513_v50  ;;  %1130 = vmatmul.msk.f32.gmra.mxu3 %vm242_vm0, %v229_v31 }
  0x8d   : > { %1083 = vmatmul.msk.f32.gmra.mxu0 %vm242_vm0, %v1507_v48  ;;  %1099 = vmatmul.msk.f32.gmra.mxu2 %vm242_vm0, %v230_v34 }
  0x8f   : > { %1115 = vmatmul.msk.f32.gmra.mxu1 %vm242_vm0, %v1507_v48  ;;  %1131 = vmatmul.msk.f32.gmra.mxu3 %vm242_vm0, %v230_v34 }
  0x93   : > { %v1630_v40 = vpop.xlane.xlu2 %643  ;;  %v632_v41 = vpop.xlane.xlu0 %631 }
  0x94   : > { %v638_v43 = vpop.xlane.xlu1 %637  ;;  %v727_v45 = vmul.f32 %v1632_v42, %v632_v41  ;;  %v731_v34 = vmul.f32 %v1632_v42, %v1630_v40 }
  0x95   : > { %1084 = vmatmul.msk.f32.gmra.mxu0 %vm242_vm0, %v1531_v58  ;;  %1100 = vmatmul.msk.f32.gmra.mxu2 %vm242_vm0, %v231_v37  ;;  %v729_v4 = vmul.f32 %v1632_v42, %v638_v43 }
  0x97   : > { %1116 = vmatmul.msk.f32.gmra.mxu1 %vm242_vm0, %v1531_v58  ;;  %1132 = vmatmul.msk.f32.gmra.mxu3 %vm242_vm0, %v231_v37 }
  0x9a   : > { %v356_v47 = vpop.f32.mrf.mxu0 }
  0x9b   : > { %v759_v48 = vsub.f32 %v356_v47, %v727_v45  ;;  %v1646_v49 = vpop.xlane.xlu2 %646  ;;  %v635_v50 = vpop.xlane.xlu0 %634 }
  0x9c   : > { %v641_v51 = vpop.xlane.xlu1 %640  ;;  %v469_v52 = vpop.f32.mrf.mxu1  ;;  %v728_v55 = vmul.f32 %v1632_v42, %v635_v50 }
  0x9d   : > { %v792_v53 = vsub.f32 %v759_v48, %v1644_v46  ;;  %v566_v3 = vadd.f32 %v1652_v59, %v469_v52  ;;  %v730_v19 = vmul.f32 %v1632_v42, %v641_v51 }
  0x9f   : > { %v824_v54 = vmin.f32 %v792_v53, 0.0 }
  0xa0   : > { %v1650_v56 = vpop.f32.mrf.mxu2 }
  0xa1   : > { %v856_v57 = vmul.f32 1.442695, %v824_v54 }
  0xa2   : > { %v359_v58 = vpop.f32.mrf.mxu0  ;;  %v1654_v60 = vpop.f32.mrf.mxu3 }
  0xa3   : > { %1188 = vpow2.f32 %v856_v57  ;;  %v760_v61 = vsub.f32 %v359_v58, %v728_v55  ;;  %v1656_v62 = vpop.xlane.xlu2 %655  ;;  %v1658_v63 = vpop.xlane.xlu0 %649  ;;  %v732_v55 = vmul.f32 %v1632_v42, %v1646_v49 }
  0xa4   : > { %v1661_v0 = vpop.xlane.xlu1 %652  ;;  %v472_v1 = vpop.f32.mrf.mxu1 }
  0xa5   : > { %v793_v2 = vsub.f32 %v760_v61, %v1644_v46  ;;  %v567_v18 = vadd.f32 %v1652_v59, %v472_v1 }
  0xa7   : > { %v825_v5 = vmin.f32 %v793_v2, 0.0 }
  0xa8   : > { %v407_v6 = vpop.f32.mrf.mxu2 }
  0xa9   : > { %v1189_v7 = vpop.eup %1188  ;;  %v858_v8 = vmul.f32 1.442695, %v825_v5 }
  0xaa   : > { %v920_v9 = vadd.f32 %v1189_v7, %v566_v3  ;;  %v362_v10 = vpop.f32.mrf.mxu0  ;;  %v1668_v11 = vpop.f32.mrf.mxu3 }
  0xab   : > { %1190 = vpow2.f32 %v858_v8  ;;  %v761_v12 = vsub.f32 %v362_v10, %v729_v4  ;;  %v1670_v13 = vpop.xlane.xlu2 %664  ;;  %v1672_v14 = vpop.xlane.xlu0 %658 }
  0xac   : > { %952 = vst [vmem:[%s1674_s10] sm:$0xff] %v920_v9  ;;  %v1677_v15 = vpop.xlane.xlu1 %661  ;;  %v475_v16 = vpop.f32.mrf.mxu1 }
  0xad   : > { %v794_v17 = vsub.f32 %v761_v12, %v1644_v46  ;;  %v568_v33 = vadd.f32 %v1652_v59, %v475_v16 }
  0xaf   : > { %v826_v20 = vmin.f32 %v794_v17, 0.0 }
  0xb0   : > { %v1682_v21 = vpop.f32.mrf.mxu2 }
  0xb1   : > { %v1191_v22 = vpop.eup %1190  ;;  %v860_v23 = vmul.f32 1.442695, %v826_v20 }
  0xb2   : > { %v921_v24 = vadd.f32 %v1191_v22, %v567_v18  ;;  %v365_v25 = vpop.f32.mrf.mxu0  ;;  %v1684_v26 = vpop.f32.mrf.mxu3 }
  0xb3   : > { %1192 = vpow2.f32 %v860_v23  ;;  %v762_v27 = vsub.f32 %v365_v25, %v730_v19  ;;  %v1686_v29 = vpop.xlane.xlu2 %673  ;;  %v1688_v30 = vpop.xlane.xlu0 %667 }
  0xb4   : > { %953 = vst [vmem:[%s1674_s10 + $0x8] sm:$0xff] %v921_v24  ;;  %v1691_v28 = vpop.xlane.xlu1 %670  ;;  %v478_v31 = vpop.f32.mrf.mxu1 }
  0xb5   : > { %v795_v32 = vsub.f32 %v762_v27, %v1644_v46  ;;  %v569_v54 = vadd.f32 %v1652_v59, %v478_v31  ;;  %v733_v31 = vmul.f32 %v1632_v42, %v1658_v63  ;;  %v583_v63 = vadd.f32 %v1652_v59, %v1668_v11 }
  0xb7   : > { %v827_v35 = vmin.f32 %v795_v32, 0.0 }
  0xb8   : > { %v413_v36 = vpop.f32.mrf.mxu2 }
  0xb9   : > { %v1193_v37 = vpop.eup %1192  ;;  %v862_v39 = vmul.f32 1.442695, %v827_v35 }
  0xba   : > { %v922_v38 = vadd.f32 %v1193_v37, %v568_v33  ;;  %v368_v41 = vpop.f32.mrf.mxu0  ;;  %v1697_v43 = vpop.f32.mrf.mxu3 }
  0xbb   : > { %1194 = vpow2.f32 %v862_v39  ;;  %v763_v44 = vsub.f32 %v368_v41, %v731_v34  ;;  %v683_v45 = vpop.xlane.xlu2 %682  ;;  %v1699_v47 = vpop.xlane.xlu0 %676 }
  0xbc   : > { %954 = vst [vmem:[%s1674_s10 + $0x10] sm:$0xff] %v922_v38  ;;  %v744_v48 = vmul.f32 %v1632_v42, %v683_v45  ;;  %v680_v50 = vpop.xlane.xlu1 %679  ;;  %v481_v51 = vpop.f32.mrf.mxu1 }
  0xbd   : > { %v796_v40 = vsub.f32 %v763_v44, %v1644_v46  ;;  %v743_v52 = vmul.f32 %v1632_v42, %v680_v50  ;;  %v570_v27 = vadd.f32 %v1652_v59, %v481_v51 }
  0xbe   : > { %v776_v53 = vsub.f32 %v407_v6, %v744_v48 }
  0xbf   : > { %v828_v57 = vmin.f32 %v796_v40, 0.0  ;;  %v775_v58 = vsub.f32 %v1650_v56, %v743_v52 }
  0xc0   : > { %v809_v61 = vsub.f32 %v776_v53, %v1644_v46  ;;  %v416_v1 = vpop.f32.mrf.mxu2  ;;  %v582_v53 = vadd.f32 %v1652_v59, %v1654_v60 }
  0xc1   : > { %v1195_v2 = vpop.eup %1194  ;;  %v864_v3 = vmul.f32 1.442695, %v828_v57  ;;  %v808_v4 = vsub.f32 %v775_v58, %v1644_v46 }
  0xc2   : > { %v841_v5 = vmin.f32 %v809_v61, 0.0  ;;  %v923_v7 = vadd.f32 %v1195_v2, %v569_v54  ;;  %v371_v8 = vpop.f32.mrf.mxu0  ;;  %v1711_v6 = vpop.f32.mrf.mxu3 }
  0xc3   : > { %1196 = vpow2.f32 %v864_v3  ;;  %v840_v9 = vmin.f32 %v808_v4, 0.0  ;;  %v764_v10 = vsub.f32 %v371_v8, %v732_v55  ;;  %v692_v49 = vpop.xlane.xlu2 %691  ;;  %v686_v12 = vpop.xlane.xlu0 %685  ;;  %v734_v8 = vmul.f32 %v1632_v42, %v1661_v0 }
  0xc4   : > { %v890_v16 = vmul.f32 1.442695, %v841_v5  ;;  %955 = vst [vmem:[%s1674_s10 + $0x18] sm:$0xff] %v923_v7  ;;  %v747_v56 = vmul.f32 %v1632_v42, %v692_v49  ;;  %v689_v17 = vpop.xlane.xlu1 %688  ;;  %v745_v18 = vmul.f32 %v1632_v42, %v686_v12  ;;  %v484_v19 = vpop.f32.mrf.mxu1  ;;  %v586_v0 = vadd.f32 %v1652_v59, %v1711_v6 }
  0xc5   : > { %v888_v20 = vmul.f32 1.442695, %v840_v9  ;;  %v797_v22 = vsub.f32 %v764_v10, %v1644_v46  ;;  %v746_v23 = vmul.f32 %v1632_v42, %v689_v17  ;;  %v571_v60 = vadd.f32 %v1652_v59, %v484_v19 }
  0xc6   : > { %1198 = vpow2.f32 %v890_v16  ;;  %v779_v24 = vsub.f32 %v416_v1, %v747_v56  ;;  %v777_v25 = vsub.f32 %v1682_v21, %v745_v18 }
  0xc7   : > { %1200 = vpow2.f32 %v888_v20  ;;  %v829_v32 = vmin.f32 %v797_v22, 0.0  ;;  %v778_v33 = vsub.f32 %v413_v36, %v746_v23 }
  0xc8   : > { %v812_v34 = vsub.f32 %v779_v24, %v1644_v46  ;;  %v810_v35 = vsub.f32 %v777_v25, %v1644_v46  ;;  %v419_v37 = vpop.f32.mrf.mxu2 }
  0xc9   : > { %v1197_v39 = vpop.eup %1196  ;;  %v866_v38 = vmul.f32 1.442695, %v829_v32  ;;  %v811_v41 = vsub.f32 %v778_v33, %v1644_v46 }
  0xca   : > { %v844_v44 = vmin.f32 %v812_v34, 0.0  ;;  %v842_v21 = vmin.f32 %v810_v35, 0.0  ;;  %v924_v45 = vadd.f32 %v1197_v39, %v570_v27  ;;  %v374_v48 = vpop.f32.mrf.mxu0  ;;  %v1725_v50 = vpop.f32.mrf.mxu3  ;;  %v584_v27 = vadd.f32 %v1652_v59, %v1684_v26 }
  0xcb   : > { %1202 = vpow2.f32 %v866_v38  ;;  %v843_v36 = vmin.f32 %v811_v41, 0.0  ;;  %v765_v51 = vsub.f32 %v374_v48, %v733_v31  ;;  %v695_v40 = vpop.xlane.xlu0 %694  ;;  %v701_v17 = vpop.xlane.xlu2 %700  ;;  %v585_v31 = vadd.f32 %v1652_v59, %v1697_v43 }
  0xcc   : > { %v1199_v52 = vpop.eup %1198  ;;  %v896_v54 = vmul.f32 1.442695, %v844_v44  ;;  %v892_v55 = vmul.f32 1.442695, %v842_v21  ;;  %956 = vst [vmem:[%s1674_s10 + $0x20] sm:$0xff] %v924_v45  ;;  %v748_v57 = vmul.f32 %v1632_v42, %v695_v40  ;;  %v698_v58 = vpop.xlane.xlu1 %697  ;;  %v750_v39 = vmul.f32 %v1632_v42, %v701_v17 }
  0xcd   : > { %v487_v61 = vpop.f32.mrf.mxu1  ;;  %v1201_v1 = vpop.eup %1200  ;;  %v937_v2 = vadd.f32 %v1199_v52, %v583_v63  ;;  %v894_v11 = vmul.f32 1.442695, %v843_v36  ;;  %v798_v3 = vsub.f32 %v765_v51, %v1644_v46  ;;  %v749_v4 = vmul.f32 %v1632_v42, %v698_v58 }
  0xce   : > { %v936_v5 = vadd.f32 %v1201_v1, %v582_v53  ;;  %1204 = vpow2.f32 %v896_v54  ;;  %v780_v7 = vsub.f32 %v419_v37, %v748_v57  ;;  %v572_v26 = vadd.f32 %v1652_v59, %v487_v61 }
  0xcf   : > { %969 = vst [vmem:[%s1674_s10 + $0x88] sm:$0xff] %v937_v2  ;;  %1206 = vpow2.f32 %v894_v11  ;;  %v830_v9 = vmin.f32 %v798_v3, 0.0  ;;  %v735_v43 = vmul.f32 %v1632_v42, %v1656_v62  ;;  %v587_v62 = vadd.f32 %v1652_v59, %v1725_v50 }
  0xd0   : > { %968 = vst [vmem:[%s1674_s10 + $0x80] sm:$0xff] %v936_v5  ;;  %1208 = vpow2.f32 %v892_v55  ;;  %v813_v10 = vsub.f32 %v780_v7, %v1644_v46  ;;  %v422_v49 = vpop.f32.mrf.mxu2 }
  0xd1   : > { %v1203_v12 = vpop.eup %1202  ;;  %v868_v16 = vmul.f32 1.442695, %v830_v9  ;;  %v781_v56 = vsub.f32 %v422_v49, %v749_v4  ;;  %v736_v49 = vmul.f32 %v1632_v42, %v1672_v14 }
  0xd2   : > { %v845_v18 = vmin.f32 %v813_v10, 0.0  ;;  %v925_v20 = vadd.f32 %v1203_v12, %v571_v60  ;;  %v377_v22 = vpop.f32.mrf.mxu0  ;;  %v535_v19 = vpop.f32.mrf.mxu3 }
  0xd3   : > { %1210 = vpow2.f32 %v868_v16  ;;  %v814_v23 = vsub.f32 %v781_v56, %v1644_v46  ;;  %v766_v24 = vsub.f32 %v377_v22, %v734_v8  ;;  %v704_v40 = vpop.xlane.xlu0 %703  ;;  %v588_v61 = vadd.f32 %v1652_v59, %v535_v19 }
  0xd4   : > { %v1205_v25 = vpop.eup %1204  ;;  %v898_v32 = vmul.f32 1.442695, %v845_v18  ;;  %957 = vst [vmem:[%s1674_s10 + $0x28] sm:$0xff] %v925_v20  ;;  %v751_v4 = vmul.f32 %v1632_v42, %v704_v40  ;;  %v707_v56 = vpop.xlane.xlu1 %706 }
  0xd5   : > { %v490_v33 = vpop.f32.mrf.mxu1  ;;  %v1207_v34 = vpop.eup %1206  ;;  %v940_v35 = vadd.f32 %v1205_v25, %v586_v0  ;;  %v846_v37 = vmin.f32 %v814_v23, 0.0  ;;  %v799_v6 = vsub.f32 %v766_v24, %v1644_v46  ;;  %v752_v25 = vmul.f32 %v1632_v42, %v707_v56 }
  0xd6   : > { %v1209_v38 = vpop.eup %1208  ;;  %v939_v41 = vadd.f32 %v1207_v34, %v585_v31  ;;  %1212 = vpow2.f32 %v898_v32  ;;  %v573_v5 = vadd.f32 %v1652_v59, %v490_v33 }
  0xd7   : > { %v938_v44 = vadd.f32 %v1209_v38, %v584_v27  ;;  %972 = vst [vmem:[%s1674_s10 + $0xa0] sm:$0xff] %v940_v35  ;;  %v900_v21 = vmul.f32 1.442695, %v846_v37  ;;  %v831_v45 = vmin.f32 %v799_v6, 0.0  ;;  %v737_v6 = vmul.f32 %v1632_v42, %v1677_v15 }
  0xd8   : > { %971 = vst [vmem:[%s1674_s10 + $0x98] sm:$0xff] %v939_v41  ;;  %v425_v48 = vpop.f32.mrf.mxu2  ;;  %v710_v41 = vpop.xlane.xlu2 %709 }
  0xd9   : > { %v1211_v63 = vpop.eup %1210  ;;  %970 = vst [vmem:[%s1674_s10 + $0x90] sm:$0xff] %v938_v44  ;;  %1214 = vpow2.f32 %v900_v21  ;;  %v870_v36 = vmul.f32 1.442695, %v831_v45  ;;  %v782_v51 = vsub.f32 %v425_v48, %v750_v39 }
  0xda   : > { %v926_v52 = vadd.f32 %v1211_v63, %v572_v26  ;;  %v380_v53 = vpop.f32.mrf.mxu0  ;;  %v538_v54 = vpop.f32.mrf.mxu3 }
  0xdb   : > { %1216 = vpow2.f32 %v870_v36  ;;  %v815_v55 = vsub.f32 %v782_v51, %v1644_v46  ;;  %v767_v57 = vsub.f32 %v380_v53, %v735_v43  ;;  %v589_v0 = vadd.f32 %v1652_v59, %v538_v54 }
  0xdc   : > { %v1213_v58 = vpop.eup %1212  ;;  %958 = vst [vmem:[%s1674_s10 + $0x30] sm:$0xff] %v926_v52  ;;  %v753_v51 = vmul.f32 %v1632_v42, %v710_v41 }
  0xdd   : > { %v493_v1 = vpop.f32.mrf.mxu1  ;;  %v941_v2 = vadd.f32 %v1213_v58, %v587_v62  ;;  %v847_v11 = vmin.f32 %v815_v55, 0.0  ;;  %v800_v3 = vsub.f32 %v767_v57, %v1644_v46  ;;  %v738_v58 = vmul.f32 %v1632_v42, %v1670_v13 }
  0xde   : > { %v574_v27 = vadd.f32 %v1652_v59, %v493_v1 }
  0xdf   : > { %v1215_v7 = vpop.eup %1214  ;;  %973 = vst [vmem:[%s1674_s10 + $0xa8] sm:$0xff] %v941_v2  ;;  %v902_v50 = vmul.f32 1.442695, %v847_v11  ;;  %v832_v60 = vmin.f32 %v800_v3, 0.0  ;;  %v713_v2 = vpop.xlane.xlu0 %712 }
  0xe0   : > { %v942_v8 = vadd.f32 %v1215_v7, %v588_v61  ;;  %v428_v9 = vpop.f32.mrf.mxu2 }
  0xe1   : > { %v1217_v10 = vpop.eup %1216  ;;  %1218 = vpow2.f32 %v902_v50  ;;  %v872_v12 = vmul.f32 1.442695, %v832_v60  ;;  %v783_v16 = vsub.f32 %v428_v9, %v751_v4  ;;  %v754_v9 = vmul.f32 %v1632_v42, %v713_v2 }
  0xe2   : > { %974 = vst [vmem:[%s1674_s10 + $0xb0] sm:$0xff] %v942_v8  ;;  %v927_v17 = vadd.f32 %v1217_v10, %v573_v5  ;;  %v383_v18 = vpop.f32.mrf.mxu0  ;;  %v541_v20 = vpop.f32.mrf.mxu3 }
  0xe3   : > { %1220 = vpow2.f32 %v872_v12  ;;  %v816_v22 = vsub.f32 %v783_v16, %v1644_v46  ;;  %v768_v19 = vsub.f32 %v383_v18, %v736_v49  ;;  %v590_v48 = vadd.f32 %v1652_v59, %v541_v20 }
  0xe4   : > { %959 = vst [vmem:[%s1674_s10 + $0x38] sm:$0xff] %v927_v17  ;;  %v739_v20 = vmul.f32 %v1632_v42, %v1688_v30 }
  0xe5   : > { %v496_v23 = vpop.f32.mrf.mxu1  ;;  %v848_v24 = vmin.f32 %v816_v22, 0.0  ;;  %v801_v14 = vsub.f32 %v768_v19, %v1644_v46 }
  0xe6   : > { %v575_v40 = vadd.f32 %v1652_v59, %v496_v23 }
  0xe7   : > { %v1219_v31 = vpop.eup %1218  ;;  %v904_v32 = vmul.f32 1.442695, %v848_v24  ;;  %v833_v33 = vmin.f32 %v801_v14, 0.0 }
  0xe8   : > { %v943_v34 = vadd.f32 %v1219_v31, %v589_v0  ;;  %v431_v35 = vpop.f32.mrf.mxu2  ;;  %v716_v0 = vpop.xlane.xlu1 %715 }
  0xe9   : > { %v1221_v37 = vpop.eup %1220  ;;  %1222 = vpow2.f32 %v904_v32  ;;  %v874_v39 = vmul.f32 1.442695, %v833_v33  ;;  %v784_v38 = vsub.f32 %v431_v35, %v752_v25  ;;  %v755_v30 = vmul.f32 %v1632_v42, %v716_v0 }
  0xea   : > { %975 = vst [vmem:[%s1674_s10 + $0xb8] sm:$0xff] %v943_v34  ;;  %v928_v26 = vadd.f32 %v1221_v37, %v574_v27  ;;  %v386_v43 = vpop.f32.mrf.mxu0  ;;  %v544_v44 = vpop.f32.mrf.mxu3 }
  0xeb   : > { %1224 = vpow2.f32 %v874_v39  ;;  %v817_v21 = vsub.f32 %v784_v38, %v1644_v46  ;;  %v769_v45 = vsub.f32 %v386_v43, %v737_v6  ;;  %v591_v50 = vadd.f32 %v1652_v59, %v544_v44 }
  0xec   : > { %960 = vst [vmem:[%s1674_s10 + $0x40] sm:$0xff] %v928_v26  ;;  %v740_v43 = vmul.f32 %v1632_v42, %v1691_v28 }
  0xed   : > { %v499_v63 = vpop.f32.mrf.mxu1  ;;  %v849_v36 = vmin.f32 %v817_v21, 0.0  ;;  %v802_v15 = vsub.f32 %v769_v45, %v1644_v46 }
  0xee   : > { %v576_v10 = vadd.f32 %v1652_v59, %v499_v63  ;;  %v719_v63 = vpop.xlane.xlu2 %718 }
  0xef   : > { %v1223_v52 = vpop.eup %1222  ;;  %v906_v53 = vmul.f32 1.442695, %v849_v36  ;;  %v834_v54 = vmin.f32 %v802_v15, 0.0  ;;  %v756_v28 = vmul.f32 %v1632_v42, %v719_v63 }
  0xf0   : > { %v944_v62 = vadd.f32 %v1223_v52, %v590_v48  ;;  %v434_v55 = vpop.f32.mrf.mxu2 }
  0xf1   : > { %v1225_v57 = vpop.eup %1224  ;;  %1226 = vpow2.f32 %v906_v53  ;;  %v876_v61 = vmul.f32 1.442695, %v834_v54  ;;  %v785_v1 = vsub.f32 %v434_v55, %v753_v51 }
  0xf2   : > { %976 = vst [vmem:[%s1674_s10 + $0xc0] sm:$0xff] %v944_v62  ;;  %v929_v11 = vadd.f32 %v1225_v57, %v575_v40  ;;  %v389_v3 = vpop.f32.mrf.mxu0  ;;  %v547_v4 = vpop.f32.mrf.mxu3 }
  0xf3   : > { %1228 = vpow2.f32 %v876_v61  ;;  %v818_v5 = vsub.f32 %v785_v1, %v1644_v46  ;;  %v770_v7 = vsub.f32 %v389_v3, %v738_v58  ;;  %v592_v31 = vadd.f32 %v1652_v59, %v547_v4 }
  0xf4   : > { %961 = vst [vmem:[%s1674_s10 + $0x48] sm:$0xff] %v929_v11  ;;  %v741_v11 = vmul.f32 %v1632_v42, %v1686_v29 }
  0xf5   : > { %v502_v60 = vpop.f32.mrf.mxu1  ;;  %v850_v8 = vmin.f32 %v818_v5, 0.0  ;;  %v803_v13 = vsub.f32 %v770_v7, %v1644_v46 }
  0xf6   : > { %v577_v35 = vadd.f32 %v1652_v59, %v502_v60 }
  0xf7   : > { %v1227_v49 = vpop.eup %1226  ;;  %v908_v12 = vmul.f32 1.442695, %v850_v8  ;;  %v835_v16 = vmin.f32 %v803_v13, 0.0 }
  0xf8   : > { %v945_v56 = vadd.f32 %v1227_v49, %v591_v50  ;;  %v437_v17 = vpop.f32.mrf.mxu2  ;;  %v722_v50 = vpop.xlane.xlu0 %721 }
  0xf9   : > { %v1229_v18 = vpop.eup %1228  ;;  %1230 = vpow2.f32 %v908_v12  ;;  %v878_v22 = vmul.f32 1.442695, %v835_v16  ;;  %v786_v19 = vsub.f32 %v437_v17, %v754_v9  ;;  %v757_v29 = vmul.f32 %v1632_v42, %v722_v50 }
  0xfa   : > { %977 = vst [vmem:[%s1674_s10 + $0xc8] sm:$0xff] %v945_v56  ;;  %v930_v23 = vadd.f32 %v1229_v18, %v576_v10  ;;  %v392_v24 = vpop.f32.mrf.mxu0  ;;  %v550_v14 = vpop.f32.mrf.mxu3 }
  0xfb   : > { %1232 = vpow2.f32 %v878_v22  ;;  %v819_v25 = vsub.f32 %v786_v19, %v1644_v46  ;;  %v771_v27 = vsub.f32 %v392_v24, %v739_v20  ;;  %v593_v40 = vadd.f32 %v1652_v59, %v550_v14 }
  0xfc   : > { %962 = vst [vmem:[%s1674_s10 + $0x50] sm:$0xff] %v930_v23  ;;  %v742_v19 = vmul.f32 %v1632_v42, %v1699_v47 }
  0xfd   : > { %v851_v32 = vmin.f32 %v819_v25, 0.0  ;;  %v804_v33 = vsub.f32 %v771_v27, %v1644_v46  ;;  %v505_v34 = vpop.f32.mrf.mxu1  ;;  %v725_v27 = vpop.xlane.xlu1 %724 }
  0xfe   : > { %v578_v54 = vadd.f32 %v1652_v59, %v505_v34  ;;  %v758_v47 = vmul.f32 %v1632_v42, %v725_v27 }
  0xff   : > { %v1231_v37 = vpop.eup %1230  ;;  %v910_v6 = vmul.f32 1.442695, %v851_v32  ;;  %v836_v39 = vmin.f32 %v804_v33, 0.0 }
 0x100   : > { %v946_v38 = vadd.f32 %v1231_v37, %v592_v31  ;;  %v440_v41 = vpop.f32.mrf.mxu2 }
 0x101   : > { %v1233_v26 = vpop.eup %1232  ;;  %1234 = vpow2.f32 %v910_v6  ;;  %v880_v44 = vmul.f32 1.442695, %v836_v39  ;;  %v787_v21 = vsub.f32 %v440_v41, %v755_v30 }
 0x102   : > { %978 = vst [vmem:[%s1674_s10 + $0xd0] sm:$0xff] %v946_v38  ;;  %v931_v45 = vadd.f32 %v1233_v26, %v577_v35  ;;  %v395_v48 = vpop.f32.mrf.mxu0  ;;  %v553_v51 = vpop.f32.mrf.mxu3 }
 0x103   : > { %1236 = vpow2.f32 %v880_v44  ;;  %v820_v36 = vsub.f32 %v787_v21, %v1644_v46  ;;  %v772_v15 = vsub.f32 %v395_v48, %v740_v43  ;;  %v594_v13 = vadd.f32 %v1652_v59, %v553_v51 }
 0x104   : > { %963 = vst [vmem:[%s1674_s10 + $0x58] sm:$0xff] %v931_v45 }
 0x105   : > { %v852_v52 = vmin.f32 %v820_v36, 0.0  ;;  %v805_v53 = vsub.f32 %v772_v15, %v1644_v46  ;;  %v508_v58 = vpop.f32.mrf.mxu1 }
 0x106   : > { %v579_v12 = vadd.f32 %v1652_v59, %v508_v58 }
 0x107   : > { %v1235_v62 = vpop.eup %1234  ;;  %v912_v55 = vmul.f32 1.442695, %v852_v52  ;;  %v837_v57 = vmin.f32 %v805_v53, 0.0 }
 0x108   : > { %v947_v61 = vadd.f32 %v1235_v62, %v593_v40  ;;  %v443_v1 = vpop.f32.mrf.mxu2 }
 0x109   : > { %v1237_v2 = vpop.eup %1236  ;;  %1238 = vpow2.f32 %v912_v55  ;;  %v882_v3 = vmul.f32 1.442695, %v837_v57  ;;  %v788_v4 = vsub.f32 %v443_v1, %v756_v28 }
 0x10a   : > { %979 = vst [vmem:[%s1674_s10 + $0xd8] sm:$0xff] %v947_v61  ;;  %v932_v5 = vadd.f32 %v1237_v2, %v578_v54  ;;  %v398_v7 = vpop.f32.mrf.mxu0  ;;  %v556_v49 = vpop.f32.mrf.mxu3 }
 0x10b   : > { %1240 = vpow2.f32 %v882_v3  ;;  %v821_v60 = vsub.f32 %v788_v4, %v1644_v46  ;;  %v773_v8 = vsub.f32 %v398_v7, %v741_v11  ;;  %v595_v33 = vadd.f32 %v1652_v59, %v556_v49 }
 0x10c   : > { %964 = vst [vmem:[%s1674_s10 + $0x60] sm:$0xff] %v932_v5 }
 0x10d   : > { %v853_v9 = vmin.f32 %v821_v60, 0.0  ;;  %v806_v10 = vsub.f32 %v773_v8, %v1644_v46  ;;  %v511_v24 = vpop.f32.mrf.mxu1 }
 0x10e   : > { %v580_v35 = vadd.f32 %v1652_v59, %v511_v24 }
 0x10f   : > { %v1239_v16 = vpop.eup %1238  ;;  %v914_v56 = vmul.f32 1.442695, %v853_v9  ;;  %v838_v17 = vmin.f32 %v806_v10, 0.0 }
 0x110   : > { %v948_v18 = vadd.f32 %v1239_v16, %v594_v13  ;;  %v446_v20 = vpop.f32.mrf.mxu2 }
 0x111   : > { %v1241_v22 = vpop.eup %1240  ;;  %1242 = vpow2.f32 %v914_v56  ;;  %v884_v0 = vmul.f32 1.442695, %v838_v17  ;;  %v789_v23 = vsub.f32 %v446_v20, %v757_v29 }
 0x112   : > { %980 = vst [vmem:[%s1674_s10 + $0xe0] sm:$0xff] %v948_v18  ;;  %v933_v14 = vadd.f32 %v1241_v22, %v579_v12  ;;  %v401_v25 = vpop.f32.mrf.mxu0  ;;  %v559_v38 = vpop.f32.mrf.mxu3 }
 0x113   : > { %1244 = vpow2.f32 %v884_v0  ;;  %v822_v31 = vsub.f32 %v789_v23, %v1644_v46  ;;  %v774_v32 = vsub.f32 %v401_v25, %v742_v19  ;;  %v596_v63 = vadd.f32 %v1652_v59, %v559_v38 }
 0x114   : > { %965 = vst [vmem:[%s1674_s10 + $0x68] sm:$0xff] %v933_v14 }
 0x115   : > { %v854_v30 = vmin.f32 %v822_v31, 0.0  ;;  %v807_v34 = vsub.f32 %v774_v32, %v1644_v46  ;;  %v514_v48 = vpop.f32.mrf.mxu1 }
 0x116   : > { %v581_v15 = vadd.f32 %v1652_v59, %v514_v48 }
 0x117   : > { %v1243_v37 = vpop.eup %1242  ;;  %v916_v6 = vmul.f32 1.442695, %v854_v30  ;;  %v839_v39 = vmin.f32 %v807_v34, 0.0 }
 0x118   : > { %v949_v41 = vadd.f32 %v1243_v37, %v595_v33  ;;  %v449_v26 = vpop.f32.mrf.mxu2 }
 0x119   : > { %v1245_v43 = vpop.eup %1244  ;;  %1246 = vpow2.f32 %v916_v6  ;;  %v886_v44 = vmul.f32 1.442695, %v839_v39  ;;  %v790_v21 = vsub.f32 %v449_v26, %v758_v47 }
 0x11a   : > { %981 = vst [vmem:[%s1674_s10 + $0xe8] sm:$0xff] %v949_v41  ;;  %v934_v45 = vadd.f32 %v1245_v43, %v580_v35  ;;  %v562_v28 = vpop.f32.mrf.mxu3 }
 0x11b   : > { %1248 = vpow2.f32 %v886_v44  ;;  %v823_v42 = vsub.f32 %v790_v21, %v1644_v46  ;;  %v597_v54 = vadd.f32 %v1652_v59, %v562_v28 }
 0x11c   : > { %966 = vst [vmem:[%s1674_s10 + $0x70] sm:$0xff] %v934_v45 }
 0x11d   : > { %v855_v36 = vmin.f32 %v823_v42, 0.0 }
 0x11f   : > { %v1247_v51 = vpop.eup %1246  ;;  %v918_v40 = vmul.f32 1.442695, %v855_v36 }
 0x120   : > { %v950_v52 = vadd.f32 %v1247_v51, %v596_v63 }
 0x121   : > { %v1249_v53 = vpop.eup %1248  ;;  %1250 = vpow2.f32 %v918_v40 }
 0x122   : > { %982 = vst [vmem:[%s1674_s10 + $0xf0] sm:$0xff] %v950_v52  ;;  %v935_v46 = vadd.f32 %v1249_v53, %v581_v15 }
 0x124   : > { %967 = vst [vmem:[%s1674_s10 + $0x78] sm:$0xff] %v935_v46 }
 0x127   : > { %v1251_v62 = vpop.eup %1250 }
 0x128   : > { %v951_v55 = vadd.f32 %v1251_v62, %v597_v54 }
 0x12a   : > { %983 = vst [vmem:[%s1674_s10 + $0xf8] sm:$0xff] %v951_v55 }
 0x12b   : > { %1279 = shalt.err (!%p1276_p3)
}
 0x12c   : > { %s1316_s6 = smov 128   ;;  %s1317_s7 = smov 8  }
 0x12d   : > { %1147 = dma.vmem_to_hbm [thread:$0]  (%p1384_p5), %s998_s15, 4096, %s1000_s0, %s985_s16, %s1316_s6, %s1316_s6, %s1317_s7  }
 0x12e PF: > { %p1153_p4 = scmp.ge.s32.totalorder %s1314_s20, 2  ;;  %s1014_s8 = sand.u32 1, %s1302_s17  }
 0x12f   : > { %s1015_s9 = scalar_lea.sflag [#allocation4], %s1014_s8 }
 0x130   : > { %p1150_p7 = pnand %p1153_p4, %p1388_p6 }
 0x132   : > { %p1151_p8 = pneg %p1150_p7 }
 0x134   : > { %1297 = dma.done.wait (%p1151_p8), %s1015_s9, 4096  }
 0x135   : > { %1299 = vsyncadd (%p1151_p8), %s1015_s9, 4294963200  ;;  %p15_p9 = scmp.ge.s32.totalorder %s1371_s22, 4   ;;  %s1879_s17 = smov %s1306_s18 }
 0x136   : > { %s1880_s18 = smov %s1310_s19  ;;  %s1881_s19 = smov %s1382_s25 }
 0x137   : > { %s1882_s20 = smov %s1371_s22  ;;  %17 = sbr.rel (!%p15_p9) target bundleno = 5 (0x5), region = 71 }
 0x13c   :  { %1021 = vsyncpa [#allocation4], 1 }
 0x13d   :  { %1023 = vsyncpa [#allocation4 + $0x1], 1 }

</bundles_post_ra>
